<compile_context>
chip_gen: v6e
topology: v6e:2x2x1
jax: 0.10.0
libtpu: 0.0.40
codegen_flags: <defaults>
</compile_context>

<pallas_src>
import numpy as np
import jax
import jax.numpy as jnp
from jax.experimental import pallas as pl
from jax.experimental.pallas import tpu as pltpu


def _round_up(n, m):
    return ((n + m - 1) // m) * m


# ----------------------------- Pallas kernel -----------------------------

def spatial_attn_kernel(c_ref, x_ref, w1_ref, w2_ref, o_ref):
    # c_ref : SMEM (2,) f32 scalars [c1, c2]
    # x_ref : VMEM (bm, C, HW) input tile (f32)
    # w1/w2 : VMEM resident bf16 weights, single-buffered
    # o_ref : VMEM (bm, 1, N_p) output tile (lane-dense N_p)
    x = x_ref[...].astype(jnp.float32)                       # (bm, C, HW)
    xm = jnp.mean(x, axis=1)                                 # channel mean      (bm, HW)
    h = jnp.dot(xm.astype(jnp.bfloat16), w1_ref[...],
                preferred_element_type=jnp.float32)          # conv1 + bn1       (bm, K_p)
    h = jnp.maximum(h + c_ref[0], 0.0)                       # ReLU (f32 epilogue)
    o = jnp.dot(h.astype(jnp.bfloat16), w2_ref[...],
                preferred_element_type=jnp.float32)          # upsample+conv2+bn2 (bm, N_p)
    o = jnp.maximum(o + c_ref[1], 0.0)                       # ReLU (f32 epilogue)
    o_ref[...] = o.reshape(o_ref.shape).astype(o_ref.dtype)


def spatial_attn_forward(x, W1, W2, c, Hu, Wu, *, bm_cap=256, vmem_budget=44 << 20):
    """x: [B, C, H, W] f32.  W1: [H*W, K_p] bf16.  W2: [K_p, N_p] bf16.  c: (2,) f32."""
    B, C, H, W = x.shape
    HW = H * W
    assert W1.shape[0] == HW and W2.shape[0] == W1.shape[1]
    K_p = W1.shape[1]
    N_p = W2.shape[1]

    x3 = x.reshape(B, C, HW)                                 # metadata-only reshape, no copy

    # --- size the batch tile against an explicit VMEM budget (works on v5e/v6e/v7x) ---
    weight_bytes = (HW * K_p + K_p * N_p) * 2                # bf16, single-buffered
    per_row = 2 * C * HW * 4 + 2 * N_p * 4 + (HW + K_p + N_p) * 4   # x dbuf + out dbuf + live vals
    bm_vmem = max(1, (vmem_budget - weight_bytes) // per_row)
    bm = min(bm_cap, bm_vmem)
    if B > 1:
        bm = min(bm, (B + 1) // 2)                           # >= 2 grid steps -> both v7x TCs busy
    bm = max(1, bm)
    if bm >= 8:
        bm = (bm // 8) * 8                                   # keep sublane-friendly tiles
    grid = (pl.cdiv(B, bm),)

    need = weight_bytes + bm * per_row
    vmem_limit = int(min(max(int(need * 1.3), 32 << 20), 64 << 20))

    out = pl.pallas_call(
        spatial_attn_kernel,
        out_shape=jax.ShapeDtypeStruct((B, 1, N_p), x.dtype),
        grid_spec=pltpu.PrefetchScalarGridSpec(
            num_scalar_prefetch=0,
            grid=grid,
            in_specs=[
                pl.BlockSpec(memory_space=pltpu.MemorySpace.SMEM),       # [c1, c2] scalars
                pl.BlockSpec((bm, C, HW), lambda i: (i, 0, 0)),          # x batch tile
                pl.BlockSpec((HW, K_p), lambda i: (0, 0),
                             pipeline_mode=pl.Buffered(1)),              # W1 resident
                pl.BlockSpec((K_p, N_p), lambda i: (0, 0),
                             pipeline_mode=pl.Buffered(1)),              # W2 resident
            ],
            out_specs=pl.BlockSpec((bm, 1, N_p), lambda i: (i, 0, 0)),
        ),
        compiler_params=pltpu.CompilerParams(
            dimension_semantics=("parallel",),
            vmem_limit_bytes=vmem_limit),
    )(c, x3, W1, W2)

    return out[:, :, :Hu * Wu].reshape(B, 1, Hu, Wu)


# ------------------- host-side, one-time parameter folding -------------------

def fold_spatial_attn_params(H, W, k1, b1, g1, be1, m1, v1,
                             k2, b2, g2, be2, m2, v2, eps=1e-5):
    k1 = np.asarray(k1, np.float64)
    b1, g1, be1, m1, v1 = float(b1), float(g1), float(be1), float(m1), float(v1)
    k2, b2, g2, be2, m2, v2 = float(k2), float(b2), float(g2), float(be2), float(m2), float(v2)

    Ho = (H + 2 - 3) // 2 + 1
    Wo = (W + 2 - 3) // 2 + 1
    Hu, Wu = 2 * Ho, 2 * Wo

    # conv1 (3x3, stride 2, pad 1, 1->1 channel) as a dense matrix on the flat [H*W] map.
    A1 = np.zeros((H * W, Ho * Wo), np.float64)
    for i in range(Ho):
        for j in range(Wo):
            for di in range(3):
                for dj in range(3):
                    h = 2 * i + di - 1
                    w = 2 * j + dj - 1
                    if 0 <= h < H and 0 <= w < W:
                        A1[h * W + w, i * Wo + j] += k1[di, dj]

    # bilinear upsample, align_corners=True (separable per-axis interpolation matrices).
    def up_mat(n_in, n_out):
        U = np.zeros((n_out, n_in), np.float64)
        if n_in == 1:
            U[:, 0] = 1.0
            return U
        for i in range(n_out):
            src = i * (n_in - 1) / (n_out - 1)
            i0 = min(int(np.floor(src)), n_in - 2)
            f = src - i0
            U[i, i0] += 1.0 - f
            U[i, i0 + 1] += f
        return U

    A_up = np.kron(up_mat(Ho, Hu), up_mat(Wo, Wu)).T         # [Ho*Wo, Hu*Wu] (row-major vec)

    # fold BatchNorm (inference) and conv biases into scales / scalar offsets.
    s1 = g1 / np.sqrt(v1 + eps)
    s2 = g2 / np.sqrt(v2 + eps)
    c1 = b1 * s1 + (be1 - m1 * s1)
    c2 = b2 * s2 + (be2 - m2 * s2)

    W1 = A1 * s1                                             # conv1 + bn1     [H*W, Ho*Wo]
    W2 = A_up * (k2 * s2)                                    # upsample+conv2+bn2 [Ho*Wo, Hu*Wu]

    # zero-pad feature dims to lane-dense multiples of 128 (exact: padded rows/cols are zero).
    K_p = _round_up(Ho * Wo, 128)
    N_p = _round_up(Hu * Wu, 128)
    W1p = np.zeros((H * W, K_p), np.float32); W1p[:, :Ho * Wo] = W1
    W2p = np.zeros((K_p, N_p), np.float32);   W2p[:Ho * Wo, :Hu * Wu] = W2

    c = jnp.asarray(np.array([c1, c2], np.float32))
    return (jnp.asarray(W1p).astype(jnp.bfloat16),
            jnp.asarray(W2p).astype(jnp.bfloat16), c, Hu, Wu)


# ----------------------------- pure-JAX reference -----------------------------

def _bilinear_upsample_ac(y, Hu, Wu):
    B, C, Ho, Wo = y.shape
    if Ho == 1:
        rows = jnp.broadcast_to(y, (B, C, Hu, Wo))
    else:
        sh = jnp.arange(Hu) * (Ho - 1) / (Hu - 1)
        i0 = jnp.clip(jnp.floor(sh).astype(jnp.int32), 0, Ho - 2)
        fh = (sh - i0)[None, None, :, None]
        rows = y[:, :, i0, :] * (1.0 - fh) + y[:, :, i0 + 1, :] * fh
    if Wo == 1:
        return jnp.broadcast_to(rows, (B, C, Hu, Wu))
    sw = jnp.arange(Wu) * (Wo - 1) / (Wu - 1)
    j0 = jnp.clip(jnp.floor(sw).astype(jnp.int32), 0, Wo - 2)
    fw = (sw - j0)[None, None, None, :]
    return rows[:, :, :, j0] * (1.0 - fw) + rows[:, :, :, j0 + 1] * fw


def spatial_attn_reference(x, k1, b1, g1, be1, m1, v1, k2, b2, g2, be2, m2, v2, eps=1e-5):
    xm = jnp.mean(x, axis=1, keepdims=True)
    y = jax.lax.conv_general_dilated(
        xm, k1.reshape(1, 1, 3, 3).astype(xm.dtype),
        window_strides=(2, 2), padding=((1, 1), (1, 1)),
        dimension_numbers=("NCHW", "OIHW", "NCHW")) + b1
    y = g1 * (y - m1) / jnp.sqrt(v1 + eps) + be1
    y = jnp.maximum(y, 0.0)
    Ho, Wo = y.shape[2], y.shape[3]
    y = _bilinear_upsample_ac(y, 2 * Ho, 2 * Wo)
    y = k2 * y + b2
    y = g2 * (y - m2) / jnp.sqrt(v2 + eps) + be2
    return jnp.maximum(y, 0.0)


# ----------------------------- demo / self-test -----------------------------

if __name__ == "__main__":
    B, C, H, W = 2, 4, 16, 16

    key = jax.random.PRNGKey(0)
    ks = jax.random.split(key, 13)
    x = jax.random.normal(ks[0], (B, C, H, W), dtype=jnp.float32)

    # conv1: Conv2d(1,1,3,s=2,p=1);  conv2: Conv2d(1,1,1);  BN params = running stats (eval).
    k1 = jax.random.uniform(ks[1], (3, 3), jnp.float32, -1.0 / 3.0, 1.0 / 3.0)
    b1 = jax.random.uniform(ks[2], (), jnp.float32, -1.0 / 3.0, 1.0 / 3.0)
    g1 = jax.random.uniform(ks[3], (), jnp.float32, 0.5, 1.5)
    be1 = jax.random.uniform(ks[4], (), jnp.float32, -0.5, 0.5)
    m1 = jax.random.uniform(ks[5], (), jnp.float32, -0.5, 0.5)
    v1 = jax.random.uniform(ks[6], (), jnp.float32, 0.5, 1.5)

    k2 = jax.random.uniform(ks[7], (), jnp.float32, -1.0, 1.0)
    b2 = jax.random.uniform(ks[8], (), jnp.float32, -1.0, 1.0)
    g2 = jax.random.uniform(ks[9], (), jnp.float32, 0.5, 1.5)
    be2 = jax.random.uniform(ks[10], (), jnp.float32, -0.5, 0.5)
    m2 = jax.random.uniform(ks[11], (), jnp.float32, -0.5, 0.5)
    v2 = jax.random.uniform(ks[12], (), jnp.float32, 0.5, 1.5)

    W1, W2, c, Hu, Wu = fold_spatial_attn_params(
        H, W, k1, b1, g1, be1, m1, v1, k2, b2, g2, be2, m2, v2)

    out = spatial_attn_forward(x, W1, W2, c, Hu, Wu)
    out = jax.block_until_ready(out)

    ref = spatial_attn_reference(x, k1, b1, g1, be1, m1, v1, k2, b2, g2, be2, m2, v2)
    assert out.shape == (B, 1, Hu, Wu) == ref.shape
    max_err = float(jnp.max(jnp.abs(out - ref)))
    # bf16 matmul path -> loosened tolerance per review
    assert jnp.allclose(out, ref, atol=3e-2, rtol=3e-2), f"max abs err {max_err}"
    assert bool(jnp.all(out >= 0.0))

    print("KERNEL_OK")
</pallas_src>

<mosaic_0001>
module attributes {stable_mosaic.version = 11 : i64} {
  func.func @spatial_attn_kernel(%arg0: i32, %arg1: memref<2xf32, #tpu.memory_space<smem>>, %arg2: memref<1x4x256xf32, #tpu.memory_space<vmem>>, %arg3: memref<256x128xbf16, #tpu.memory_space<vmem>>, %arg4: memref<128x256xbf16, #tpu.memory_space<vmem>>, %arg5: memref<1x1x256xf32, #tpu.memory_space<vmem>>) attributes {dimension_semantics = [#tpu.dimension_semantics<parallel>], iteration_bounds = array<i64: 2>, scalar_prefetch = 0 : i64, scratch_operands = 0 : i64, tpu.core_type = #tpu.core_type<tc>, window_params = [{transform_indices = @transform_0, window_bounds = array<i64: 2>}, {transform_indices = @transform_1, window_bounds = array<i64: 1, 4, 256>}, {pipeline_mode = #tpu.pipeline_mode<synchronous>, transform_indices = @transform_2, window_bounds = array<i64: 256, 128>}, {pipeline_mode = #tpu.pipeline_mode<synchronous>, transform_indices = @transform_3, window_bounds = array<i64: 128, 256>}, {transform_indices = @transform_4, window_bounds = array<i64: 1, 1, 256>}]} {
    %c0 = arith.constant 0 : index
    %c0_0 = arith.constant 0 : index
    %c0_1 = arith.constant 0 : index
    %0 = vector.load %arg2[%c0, %c0_0, %c0_1] : memref<1x4x256xf32, #tpu.memory_space<vmem>>, vector<1x4x256xf32>
    %cst = arith.constant dense<0.000000e+00> : vector<1x256xf32>
    %1 = vector.multi_reduction <add>, %0, %cst [1] : vector<1x4x256xf32> to vector<1x256xf32>
    %cst_2 = arith.constant 4.000000e+00 : f32
    %2 = vector.broadcast %cst_2 : f32 to vector<1x256xf32>
    %3 = arith.divf %1, %2 : vector<1x256xf32>
    %4 = arith.truncf %3 : vector<1x256xf32> to vector<1x256xbf16>
    %c0_3 = arith.constant 0 : index
    %c0_4 = arith.constant 0 : index
    %5 = vector.load %arg3[%c0_3, %c0_4] : memref<256x128xbf16, #tpu.memory_space<vmem>>, vector<256x128xbf16>
    %cst_5 = arith.constant dense<0.000000e+00> : vector<1x128xf32>
    %6 = tpu.matmul %4, %5, %cst_5 {dimension_numbers = #tpu.dot_dimension_numbers<[1], [0], [0], [1], [0, 0, 1, 1], [], []>} : vector<1x256xbf16>, vector<256x128xbf16>, vector<1x128xf32> -> vector<1x128xf32>
    %c0_6 = arith.constant 0 : index
    %7 = memref.load %arg1[%c0_6] : memref<2xf32, #tpu.memory_space<smem>>
    %8 = vector.broadcast %7 : f32 to vector<1x128xf32>
    %9 = arith.addf %6, %8 : vector<1x128xf32>
    %cst_7 = arith.constant 0.000000e+00 : f32
    %10 = vector.broadcast %cst_7 : f32 to vector<1x128xf32>
    %11 = arith.maximumf %9, %10 : vector<1x128xf32>
    %12 = arith.truncf %11 : vector<1x128xf32> to vector<1x128xbf16>
    %c0_8 = arith.constant 0 : index
    %c0_9 = arith.constant 0 : index
    %13 = vector.load %arg4[%c0_8, %c0_9] : memref<128x256xbf16, #tpu.memory_space<vmem>>, vector<128x256xbf16>
    %cst_10 = arith.constant dense<0.000000e+00> : vector<1x256xf32>
    %14 = tpu.matmul %12, %13, %cst_10 {dimension_numbers = #tpu.dot_dimension_numbers<[1], [0], [0], [1], [0, 0, 1, 1], [], []>} : vector<1x128xbf16>, vector<128x256xbf16>, vector<1x256xf32> -> vector<1x256xf32>
    %c1 = arith.constant 1 : index
    %15 = memref.load %arg1[%c1] : memref<2xf32, #tpu.memory_space<smem>>
    %16 = vector.broadcast %15 : f32 to vector<1x256xf32>
    %17 = arith.addf %14, %16 : vector<1x256xf32>
    %cst_11 = arith.constant 0.000000e+00 : f32
    %18 = vector.broadcast %cst_11 : f32 to vector<1x256xf32>
    %19 = arith.maximumf %17, %18 : vector<1x256xf32>
    %20 = vector.shape_cast %19 : vector<1x256xf32> to vector<1x1x256xf32>
    %c0_12 = arith.constant 0 : index
    %c0_13 = arith.constant 0 : index
    %c0_14 = arith.constant 0 : index
    %21 = vector.load %arg5[%c0_12, %c0_13, %c0_14] : memref<1x1x256xf32, #tpu.memory_space<vmem>>, vector<1x1x256xf32>
    tpu.vector_store %arg5[%c0_12, %c0_13, %c0_14], %20 {strides = array<i32>} : memref<1x1x256xf32, #tpu.memory_space<vmem>>, vector<1x1x256xf32>,
    return
  }
  func.func @transform_0(%arg0: i32) -> i32 {
    %c0_i32 = arith.constant 0 : i32
    %c0_i32_0 = arith.constant 0 : i32
    return %c0_i32 : i32
  }
  func.func @transform_1(%arg0: i32) -> (i32, i32, i32) {
    %c0_i32 = arith.constant 0 : i32
    %c0_i32_0 = arith.constant 0 : i32
    %c0_i32_1 = arith.constant 0 : i32
    return %arg0, %c0_i32, %c0_i32_0 : i32, i32, i32
  }
  func.func @transform_2(%arg0: i32) -> (i32, i32) {
    %c0_i32 = arith.constant 0 : i32
    %c0_i32_0 = arith.constant 0 : i32
    %c0_i32_1 = arith.constant 0 : i32
    return %c0_i32, %c0_i32_0 : i32, i32
  }
  func.func @transform_3(%arg0: i32) -> (i32, i32) {
    %c0_i32 = arith.constant 0 : i32
    %c0_i32_0 = arith.constant 0 : i32
    %c0_i32_1 = arith.constant 0 : i32
    return %c0_i32, %c0_i32_0 : i32, i32
  }
  func.func @transform_4(%arg0: i32) -> (i32, i32, i32) {
    %c0_i32 = arith.constant 0 : i32
    %c0_i32_0 = arith.constant 0 : i32
    %c0_i32_1 = arith.constant 0 : i32
    return %arg0, %c0_i32, %c0_i32_0 : i32, i32, i32
  }
}

</mosaic_0001>

<bundles_post_ra>
// kernel: tpu_custom_call.1
= control target key start
LH: loop header
LB: loop body
LE: loop exit
PB: predicated region body
PF: predicated region fallthrough
CT: control target
= control target key end

     0   :  { %9 = vsyncpa [#allocation5], 0  ;;  %s1316_s0 = inlined_call_operand.hbm [shape: f32[2], index: 0, kind: input, shape index: {}]   ;;  %s1317_s1 = inlined_call_operand.hbm [shape: f32[2,4,256], index: 1, kind: input, shape index: {}]   ;;  %s1318_s2 = inlined_call_operand.hbm [shape: bf16[256,128], index: 2, kind: input, shape index: {}]   ;;  %s1319_s3 = inlined_call_operand.hbm [shape: bf16[128,256], index: 3, kind: input, shape index: {}]   ;;  %s1320_s4 = inlined_call_operand.hbm [shape: f32[2,1,256], index: 4, kind: output, shape index: {}]  }
   0x1   :  { %10 = vsyncpa [#allocation3], 0 }
   0x2   :  { %12 = vsyncpa [#allocation3 + $0x1], 0 }
   0x3   :  { %13 = vsyncpa [#allocation8], 0 }
   0x4   :  { %14 = vsyncpa [#allocation4], 0 }
   0x5   :  { %16 = vsyncpa [#allocation4 + $0x1], 0  ;;  %s1134_s15 = smov 0   ;;  %s1136_s16 = smov 0  }
   0x6   :  { %s1138_s17 = smov 0   ;;  %s1140_s18 = smov 0  }
   0x7 LB: > { %s1155_s19 = sadd.s32 4294967295, %s1096_s18   ;;  %s732_s20 = sadd.s32 4294967294, %s1096_s18   ;;  %s1096_s18 = sphi %s1140_s18, %s1343_s18   ;;  %s1092_s17 = sphi %s1138_s17, %s1342_s17   ;;  %s1088_s16 = sphi %s1136_s16, %s1341_s16   ;;  %s1084_s15 = sphi %s1134_s15, %s1340_s15  }
   0x8   : > { %p63_p0 = scmp.ne.s32.totalorder %s1088_s16, %s1084_s15  ;;  %p1321_p1 = scmp.eq.s32.totalorder %s1155_s19, 0 }
   0x9   : > { %p129_p2 = scmp.eq.s32.totalorder %s1155_s19, 1  ;;  %p135_p3 = scmp.eq.s32.totalorder %s732_s20, 1 }
   0xa   : > { %p1164_p4 = por %p1321_p1, %p63_p0  ;;  %p733_p5 = scmp.ge.s32.totalorder %s1096_s18, 1 }
   0xb   : > { %p1169_p6 = por %p135_p3, %p63_p0  ;;  %p142_p7 = scmp.lt.s32.totalorder %s1096_s18, 3 }
   0xc   : > { %s1325_s21 = scalar_select %p1164_p4, 1, 0 }
   0xd   : > { %s1326_s22 = scalar_select %p1169_p6, 1, 0 }
   0xe   : > { %p1174_p8 = pnand %p733_p5, %p142_p7  ;;  %s1098_s24 = smov [#allocation7]  }
   0xf   : > { %s163_s25 = sshll.u32 %s1098_s24, 4  ;;  %s1099_s27 = smov [#allocation9]   ;;  %s164_s25 = int_to_ptr.vmem [resolvable:$true] %s163_s25 }
  0x10   : > { %s1327_s23 = scalar_select %p1174_p8, 1, 0 }
  0x11   : > { %p825_p9 = pneg %p1174_p8  ;;  %s176_s28 = sshll.u32 %s1099_s27, 4  ;;  %s1187_s28 = int_to_ptr.vmem [resolvable:$true] %s176_s28 }
  0x12   : > { %s944_s29 = scalar_lea.vmem %s164_s25, 2048  ;;  %p952_p5 = scmp.lt.s32.totalorder %s164_s25, %s164_s25 }
  0x13   : > { %p1183_p11 = pnand %p825_p9, %p1321_p1  ;;  %p945_p13 = scmp.ne.s32.totalorder %s164_s25, %s944_s29 }
  0x14   : > { %p953_p7 = scmp.lt.s32.totalorder %s944_s29, %s944_s29 }
  0x15   : > { %p935_p12 = pneg %p1183_p11 }
  0x16   : > { %p954_p9 = por %p953_p7, %p952_p5 }
  0x17   : > { %p947_p0 = pnand %p945_p13, %p935_p12 }
  0x19   : > { %p948_p3 = pneg %p947_p0 }
  0x1b   : > { %p955_p10 = pnand %p954_p9, %p948_p3 }
  0x1d   : > { %958 = shalt.err (!%p955_p10)
}
  0x1e   : > { %s1100_s30 = smov 64   ;;  %s1101_s5 = smov 4  }
  0x1f   : > { %831 = dma.hbm_to_vmem [thread:$0]  (!%p1183_p11), %s1318_s2, 2048, %s164_s25, [#allocation8], %s1100_s30, %s1100_s30, %s1101_s5  }
  0x20   : > { %s1102_s8 = smov [#allocation2]   ;;  %s981_s11 = scalar_lea.vmem %s1187_s28, 2048 }
  0x21   : > { %828 = dma.hbm_to_smem (!%p1183_p11), %s1316_s0, 16, %s1102_s8, [#allocation5]  }
  0x22   : > { %p982_p10 = scmp.ne.s32.totalorder %s1187_s28, %s981_s11  ;;  %p989_p3 = scmp.lt.s32.totalorder %s1187_s28, %s1187_s28 }
  0x23   : > { %p990_p5 = scmp.lt.s32.totalorder %s981_s11, %s981_s11 }
  0x24   : > { %p984_p13 = pnand %p982_p10, %p935_p12 }
  0x25   : > { %p991_p7 = por %p990_p5, %p989_p3 }
  0x26   : > { %p985_p0 = pneg %p984_p13 }
  0x28   : > { %p992_p9 = pnand %p991_p7, %p985_p0 }
  0x2a   : > { %995 = shalt.err (!%p992_p9)
}
  0x2b   : > { %s1103_s12 = smov 128   ;;  %s1104_s13 = smov 8  }
  0x2c   : > { %834 = dma.hbm_to_vmem [thread:$0]  (!%p1183_p11), %s1319_s3, 2048, %s1187_s28, [#allocation8], %s1103_s12, %s1103_s12, %s1104_s13  }
  0x2d   : > { %s1218_s24 = sadd.s32 1, %s1096_s18   ;;  %s50_s27 = sadd.s32 1, %s1092_s17 }
  0x2e   : > { %s47_s25 = ssub.s32 %s1096_s18, %s1218_s24  ;;  %p57_p10 = scmp.ne.s32.totalorder %s1092_s17, %s1088_s16 }
  0x2f   : > { %p48_p12 = scmp.eq.s32.totalorder %s47_s25, 0  ;;  %p58_p13 = scmp.eq.s32.totalorder %s1096_s18, 0 }
  0x30   : > { %p846_p0 = scmp.lt.s32.totalorder %s1096_s18, 2  ;;  %p1232_p5 = por %p129_p2, %p57_p10 }
  0x31   : > { %s1228_s29 = scalar_select %p48_p12, %s1092_s17, %s50_s27  }
  0x32   : > { %p59_p3 = por %p58_p13, %p57_p10  ;;  %s190_s26 = sand.u32 1, %s1092_s17  }
  0x33   : > { %s1329_s30 = scalar_select %p1232_p5, 1, 0 }
  0x34   : > { %s785_s5 = sshll.u32 %s1096_s18, 7  ;;  %s738_s28 = sshll.u32 %s190_s26, 3 }
  0x35   : > { %s1241_s8 = scalar_lea.hbm %s1317_s1, %s785_s5  ;;  %s194_s9 = scalar_lea.vmem [#allocation6], %s738_s28 }
  0x36   : > { %s202_s10 = sshll.u32 %s194_s9, 4  ;;  %p1243_p11 = pnand %p846_p0, %p59_p3  ;;  %s203_s10 = int_to_ptr.vmem [resolvable:$true] %s202_s10 }
  0x37   : > { %s191_s12 = scalar_lea.sflag [#allocation3], %s190_s26  ;;  %s996_s13 = scalar_lea.hbm %s1241_s8, 128 }
  0x38   : > { %p997_p2 = scmp.ne.s32.totalorder %s1241_s8, %s996_s13  ;;  %p998_p7 = pneg %p1243_p11 }
  0x39   : > { %s1001_s25 = scalar_lea.hbm %s1317_s1, 256  ;;  %p1002_p10 = scmp.lt.s32.totalorder %s1241_s8, %s1317_s1 }
  0x3a   : > { %p999_p9 = pnand %p998_p7, %p997_p2  ;;  %p1003_p13 = scmp.lt.s32.totalorder %s1001_s25, %s996_s13 }
  0x3c   : > { %p1000_p12 = pneg %p999_p9  ;;  %p1004_p0 = por %p1003_p13, %p1002_p10 }
  0x3e   : > { %p1005_p3 = pnand %p1004_p0, %p1000_p12 }
  0x40   : > { %1008 = shalt.err (!%p1005_p3)
}
  0x41   : > { %s1009_s28 = scalar_lea.vmem %s203_s10, 128  ;;  %s1105_s26 = smov [#allocation6]  }
  0x42   : > { %p1010_p1 = scmp.ne.s32.totalorder %s203_s10, %s1009_s28  ;;  %s1014_s6 = sshll.u32 %s1105_s26, 4  ;;  %s1015_s6 = int_to_ptr.vmem [resolvable:$false] %s1014_s6 }
  0x43   : > { %s1016_s7 = scalar_lea.vmem %s1015_s6, 256  ;;  %p1017_p2 = scmp.lt.s32.totalorder %s203_s10, %s1015_s6 }
  0x44   : > { %p1012_p6 = pnand %p1010_p1, %p998_p7  ;;  %p1018_p9 = scmp.lt.s32.totalorder %s1016_s7, %s1009_s28 }
  0x46   : > { %p1013_p5 = pneg %p1012_p6  ;;  %p1019_p4 = por %p1018_p9, %p1017_p2 }
  0x48   : > { %p1020_p8 = pnand %p1019_p4, %p1013_p5 }
  0x4a   : > { %1023 = shalt.err (!%p1020_p8)
}
  0x4b   : > { %838 = dma.hbm_to_vmem [thread:$0]  (!%p1243_p11), %s1241_s8, 128, %s203_s10, %s191_s12  }
  0x4c   : > { %p1331_p12 = scmp.ne.s32.totalorder %s1327_s23, 0 }
  0x4d   : > { %p1332_p10 = scmp.eq.s32.totalorder (!%p1331_p12), %s1155_s19, 0 }
  0x4e   : > { %211 = sbr.rel (%p1331_p12) target bundleno = 547 (0x223), region = 36 }
  0x53   : > { %1067 = dma.done.wait (%p1332_p10), [#allocation5], 16   ;;  %p1333_p1 = pmov %p1332_p10 }
  0x54   : > { %s1268_s9 = sand.u32 1, %s1088_s16   ;;  %p1334_p4 = scmp.ne.s32.totalorder %s1325_s21, 0 }
  0x55   : > { %1069 = vsyncadd (%p1333_p1), [#allocation5], 4294967280  ;;  %s743_s13 = sshll.u32 %s1268_s9, 3  ;;  %s218_s14 = scalar_lea.sflag [#allocation3], %s1268_s9 }
  0x56   : > { %s221_s11 = scalar_lea.vmem [#allocation6], %s743_s13 }
  0x57   : > { %1071 = dma.done.wait (%p1334_p4), %s218_s14, 128  }
  0x58   : > { %1073 = vsyncadd (%p1334_p4), %s218_s14, 4294967168  ;;  %p1335_p6 = pmov %p1333_p1 }
  0x59   : > { %p1336_p8 = pmov %p1333_p1 }
  0x5a   : > { %1075 = dma.done.wait (%p1335_p6), [#allocation8], 4096  }
  0x5b   : > { %1077 = vsyncadd (%p1336_p8), [#allocation8], 4294963200 }
  0x5c   : > { %234 = sfence }
  0x5d   : > { %v892_v0 = vld [vmem:[#allocation7 + $0x78] sm:$0xff]   ;;  %v894_v2 = vld [vmem:[#allocation7 + $0x70] sm:$0xff]   ;;  %v896_v4 = vld [vmem:[#allocation7 + $0x68] sm:$0xff]   ;;  %vm260_vm0 = vcmask 1043456   ;;  %v1106_v52 = vmov 0   ;;  %s312_s21 = sld [smem:[#allocation2]] }
  0x5e   : > { %v893_v1 = vld [vmem:[#allocation7 + $0x38] sm:$0xff]   ;;  %787 = vmatprep.subr.bf16.mxu0 %v892_v0  ;;  %v895_v3 = vld [vmem:[#allocation7 + $0x30] sm:$0xff]   ;;  %v897_v5 = vld [vmem:[#allocation7 + $0x28] sm:$0xff]   ;;  %582 = vmatprep.mubr.bf16.mxu1 %v1106_v52  ;;  %s763_s23 = sld [smem:[#allocation2 + $0x1]]  ;;  %v1107_v62 = vmov 1966171168   ;;  %v599_v0 = vlaneseq }
  0x5f   : > { %788 = vmatpush3.bf16.msra.mxu0 %v893_v1  ;;  %v898_v6 = vld [vmem:[#allocation7 + $0x60] sm:$0xff]   ;;  %v900_v8 = vld [vmem:[#allocation7 + $0x58] sm:$0xff]   ;;  %v902_v10 = vld [vmem:[#allocation7 + $0x50] sm:$0xff]   ;;  %v597_v63 = vunpack.c.l.s4 %v1107_v62  ;;  %s746_s8 = sshll.u32 %s1268_s9, 1  ;;  %s786_s10 = sshll.u32 %s1155_s19, 5 }
  0x60   : > { %789 = vmatprep.subr.bf16.mxu0 %v894_v2  ;;  %v899_v7 = vld [vmem:[#allocation7 + $0x20] sm:$0xff]   ;;  %v901_v9 = vld [vmem:[#allocation7 + $0x18] sm:$0xff]   ;;  %v903_v16 = vld [vmem:[#allocation7 + $0x10] sm:$0xff]   ;;  %s254_s12 = scalar_lea.vmem [#allocation10], %s746_s8  ;;  %vm613_vm1 = vcmp.lt.s32.totalorder %v599_v0, 256  ;;  %s629_s5 = scalar_lea.hbm %s1320_s4, %s786_s10 }
  0x61   : > { %v256_v11 = vld [vmem:[%s221_s11] sm:$0xff]  ;;  %v912_v18 = vld [vmem:[#allocation9 + $0x64] ss:$8 sps:$4 sm:$0xff]   ;;  %v914_v23 = vld [vmem:[#allocation9 + $0x60] ss:$8 sps:$4 sm:$0xff]   ;;  %s631_s20 = sshll.u32 %s254_s12, 4  ;;  %s632_s20 = int_to_ptr.vmem [resolvable:$true] %s631_s20 }
  0x62   : > { %v258_v12 = vcombine.high %v256_v11, %v256_v11  ;;  %v261_v13 = vsel %vm260_vm0, %v256_v11, 0.0  ;;  %v909_v14 = vld [vmem:[#allocation9 + $0x74] ss:$8 sps:$4 sm:$0xff]   ;;  %v911_v15 = vld [vmem:[#allocation9 + $0x70] ss:$8 sps:$4 sm:$0xff]   ;;  %v904_v19 = vld [vmem:[#allocation7 + $0x48] sm:$0xff]  }
  0x63   : > { %790 = vmatpush3.bf16.msra.mxu0 %v895_v3  ;;  %v262_v17 = vrot.slane %v261_v13, 4  ;;  %550 = vmatprep.subr.bf16.mxu1 %v909_v14  ;;  %v915_v24 = vld [vmem:[#allocation9 + $0x54] ss:$8 sps:$4 sm:$0xff]   ;;  %v905_v25 = vld [vmem:[#allocation7 + $0x8] sm:$0xff]   ;;  %v906_v26 = vld [vmem:[#allocation7 + $0x40] sm:$0xff]   ;;  %v313_v54 = vstv %s312_s21  ;;  %s617_s28 = scalar_lea.sflag [#allocation4], %s1268_s9 }
  0x64   : > { %791 = vmatprep.subr.bf16.mxu0 %v896_v4  ;;  %v268_v20 = vsel %vm260_vm0, %v258_v12, 0.0  ;;  %551 = vmatpush1.bf16.msra.mxu1 %v911_v15  ;;  %v917_v29 = vld [vmem:[#allocation9 + $0x50] ss:$8 sps:$4 sm:$0xff]   ;;  %v918_v32 = vld [vmem:[#allocation9 + $0x44] ss:$8 sps:$4 sm:$0xff]   ;;  %v469_v1 = vstv %s763_s23  ;;  %v598_v4 = vunpack.c.0.s8 %v597_v63  ;;  %s1024_s26 = scalar_lea.vmem %s632_s20, 32 }
  0x65   : > { %v269_v21 = vrot.slane %v268_v20, 4  ;;  %v263_v22 = vadd.f32 %v262_v17, %v261_v13  ;;  %552 = vmatprep.subr.bf16.mxu1 %v912_v18  ;;  %v907_v35 = vld [vmem:[#allocation7] sm:$0xff]   ;;  %v921_v39 = vld [vmem:[#allocation9 + $0x34] ss:$8 sps:$4 sm:$0xff]   ;;  %v923_v43 = vld [vmem:[#allocation9 + $0x30] ss:$8 sps:$4 sm:$0xff]   ;;  %p1025_p5 = scmp.ne.s32.totalorder %s632_s20, %s1024_s26 }
  0x66   : > { %v920_v38 = vld [vmem:[#allocation9 + $0x40] ss:$8 sps:$4 sm:$0xff]   ;;  %v924_v45 = vld [vmem:[#allocation9 + $0x24] ss:$8 sps:$4 sm:$0xff]   ;;  %v927_v48 = vld [vmem:[#allocation9 + $0x14] ss:$8 sps:$4 sm:$0xff]  }
  0x67   : > { %792 = vmatpush3.bf16.msra.mxu0 %v897_v5  ;;  %v270_v27 = vadd.f32 %v269_v21, %v268_v20  ;;  %v264_v28 = vrot.slane %v263_v22, 2  ;;  %v926_v47 = vld [vmem:[#allocation9 + $0x20] ss:$8 sps:$4 sm:$0xff]   ;;  %v929_v49 = vld [vmem:[#allocation9 + $0x10] ss:$8 sps:$4 sm:$0xff]   ;;  %v600_v5 = vshrl.u32 %v599_v0, 7 }
  0x68   : > { %793 = vmatprep.subr.bf16.mxu0 %v898_v6  ;;  %553 = vmatpush1.bf16.msra.mxu1 %v914_v23  ;;  %v930_v50 = vld [vmem:[#allocation9 + $0x4] ss:$8 sps:$4 sm:$0xff]   ;;  %v932_v51 = vld [vmem:[#allocation9] ss:$8 sps:$4 sm:$0xff]   ;;  %p1337_p11 = scmp.ne.s32.totalorder %s1329_s30, 0  ;;  %s1108_s6 = smov [#allocation10]  }
  0x69   : > { %v271_v30 = vrot.slane %v270_v27, 2  ;;  %v265_v31 = vadd.f32 %v264_v28, %v263_v22  ;;  %554 = vmatprep.subr.bf16.mxu1 %v915_v24  ;;  %v601_v11 = vsub.s32 %v598_v4, %v600_v5  ;;  %s1028_s7 = sshll.u32 %s1108_s6, 4  ;;  %s1029_s7 = int_to_ptr.vmem [resolvable:$false] %s1028_s7 }
  0x6a   : > { %p1026_p7 = pnand %p1025_p5, %p1337_p11  ;;  %s1030_s19 = scalar_lea.vmem %s1029_s7, 64 }
  0x6b   : > { %794 = vmatpush3.bf16.msra.mxu0 %v899_v7  ;;  %v272_v33 = vadd.f32 %v271_v30, %v270_v27  ;;  %v266_v34 = vrot.slane %v265_v31, 1  ;;  %p1031_p0 = scmp.lt.s32.totalorder %s632_s20, %s1029_s7  ;;  %p1032_p3 = scmp.lt.s32.totalorder %s1030_s19, %s1024_s26 }
  0x6c   : > { %795 = vmatprep.subr.bf16.mxu0 %v900_v8  ;;  %555 = vmatpush1.bf16.msra.mxu1 %v917_v29  ;;  %p1027_p13 = pneg %p1026_p7 }
  0x6d   : > { %v273_v36 = vrot.slane %v272_v33, 1  ;;  %v267_v37 = vadd.f32 %v266_v34, %v265_v31  ;;  %556 = vmatprep.subr.bf16.mxu1 %v918_v32  ;;  %p1033_p2 = por %p1032_p3, %p1031_p0 }
  0x6f   : > { %796 = vmatpush3.bf16.msra.mxu0 %v901_v9  ;;  %v274_v40 = vadd.f32 %v273_v36, %v272_v33  ;;  %v276_v41 = vmul.f32 0.25, %v267_v37  ;;  %p1034_p9 = pnand %p1033_p2, %p1027_p13 }
  0x70   : > { %797 = vmatprep.subr.bf16.mxu0 %v902_v10  ;;  %557 = vmatpush1.bf16.msra.mxu1 %v920_v38 }
  0x71   : > { %v277_v42 = vmul.f32 0.25, %v274_v40  ;;  %v278_v44 = vpack.c.bf16 %v276_v41, %v276_v41  ;;  %558 = vmatprep.subr.bf16.mxu1 %v921_v39 }
  0x73   : > { %798 = vmatpush3.bf16.msra.mxu0 %v903_v16  ;;  %v279_v46 = vpack.c.bf16 %v277_v42, %v277_v42 }
  0x74   : > { %799 = vmatprep.subr.bf16.mxu0 %v904_v19  ;;  %559 = vmatpush1.bf16.msra.mxu1 %v923_v43 }
  0x75   : > { %442 = vmatprep.mubr.bf16.mxu0 %v279_v46  ;;  %560 = vmatprep.subr.bf16.mxu1 %v924_v45 }
  0x77   : > { %800 = vmatpush3.bf16.msra.mxu0 %v905_v25 }
  0x78   : > { %801 = vmatprep.subr.bf16.mxu0 %v906_v26  ;;  %561 = vmatpush1.bf16.msra.mxu1 %v926_v47 }
  0x79   : > { %562 = vmatprep.subr.bf16.mxu1 %v927_v48 }
  0x7b   : > { %802 = vmatpush3.bf16.msra.mxu0 %v907_v35 }
  0x7c   : > { %563 = vmatpush1.bf16.msra.mxu1 %v929_v49 }
  0x7d   : > { %564 = vmatprep.subr.bf16.mxu1 %v930_v50 }
  0x7e   : > { %443 = vmatmul.mubr.bf16.vlgmr.msra.gmra.mxu0 %v278_v44 }
  0x80   : > { %565 = vmatpush1.bf16.msra.mxu1 %v932_v51 }
 0x13e   : > { %v803_v53 = vpop.f32.mrf.mxu0 }
 0x140   : > { %v804_v55 = vpop.f32.mrf.mxu0 }
 0x141   : > { %v805_v56 = vadd.f32 %v804_v55, %v803_v53 }
 0x142   : > { %v806_v57 = vpop.f32.mrf.mxu0 }
 0x143   : > { %v445_v58 = vadd.f32 %v805_v56, %v313_v54 }
 0x144   : > { %v807_v59 = vpop.f32.mrf.mxu0 }
 0x145   : > { %v450_v60 = vmax.f32 %v445_v58, 0.0 }
 0x147   : > { %v451_v61 = vpack.c.bf16 %v450_v60, %v450_v60 }
 0x149   : > { %583 = vmatmul.mubr.bf16.vlgmr.msra.gmra.mxu1 %v451_v61 }
 0x209   : > { %v584_v2 = vpop.f32.mrf.mxu1 }
 0x20a   : > { %v585_v3 = vadd.f32 %v584_v2, %v469_v1 }
 0x20b   : > { %v586_v6 = vpop.f32.mrf.mxu1 }
 0x20c   : > { %v587_v7 = vadd.f32 %v586_v6, %v469_v1  ;;  %v591_v9 = vmax.f32 %v585_v3, 0.0 }
 0x20d   : > { %v588_v8 = vpop.f32.mrf.mxu1 }
 0x20e   : > { %v592_v10 = vmax.f32 %v587_v7, 0.0 }
 0x20f   : > { %v589_v12 = vpop.f32.mrf.mxu1 }
 0x210   : > { %v595_v13 = vcombine.low %v591_v9, %v592_v10 }
 0x212   : > { %v602_v14 = vrot.slane %v595_v13, %v601_v11 }
 0x214   : > { %v609_v15 = vrot.slane %v602_v14, %v601_v11 }
 0x216   : > { %615 = vst.msk [vmem:[%s254_s12] sm:$0x3] %vm613_vm1, %v609_v15 }
 0x217   : > { %1037 = shalt.err (!%p1034_p9)
}
 0x218   : > { %s1038_s13 = scalar_lea.hbm %s629_s5, 32  ;;  %s1042_s11 = scalar_lea.hbm %s1320_s4, 64 }
 0x219   : > { %p1039_p12 = scmp.ne.s32.totalorder %s629_s5, %s1038_s13  ;;  %p1043_p4 = scmp.lt.s32.totalorder %s629_s5, %s1320_s4 }
 0x21a   : > { %p1044_p6 = scmp.lt.s32.totalorder %s1042_s11, %s1038_s13 }
 0x21b   : > { %p1040_p10 = pnand %p1039_p12, %p1337_p11 }
 0x21c   : > { %p1045_p8 = por %p1044_p6, %p1043_p4 }
 0x21d   : > { %p1041_p1 = pneg %p1040_p10 }
 0x21f   : > { %p1046_p5 = pnand %p1045_p8, %p1041_p1 }
 0x221   : > { %1049 = shalt.err (!%p1046_p5)
}
 0x222   : > { %823 = dma.vmem_to_hbm [thread:$0]  (%p1337_p11), %s632_s20, 32, %s629_s5, %s617_s28  }
 0x223 PF: > { %s643_s8 = sand.u32 1, %s1084_s15   ;;  %p1338_p7 = scmp.ne.s32.totalorder %s1326_s22, 0 }
 0x224   : > { %p1339_p13 = scmp.ge.s32.totalorder %s1096_s18, 2  ;;  %s644_s10 = scalar_lea.sflag [#allocation4], %s643_s8 }
 0x226   : > { %p840_p0 = pnand %p1339_p13, %p1338_p7 }
 0x228   : > { %p841_p3 = pneg %p840_p0 }
 0x22a   : > { %1079 = dma.done.wait (%p841_p3), %s644_s10, 32  }
 0x22b   : > { %1081 = vsyncadd (%p841_p3), %s644_s10, 4294967264  ;;  %p19_p2 = scmp.ge.s32.totalorder %s1218_s24, 4   ;;  %s1340_s15 = smov %s1088_s16 }
 0x22c   : > { %s1341_s16 = smov %s1092_s17  ;;  %s1342_s17 = smov %s1228_s29 }
 0x22d   : > { %s1343_s18 = smov %s1218_s24  ;;  %21 = sbr.rel (!%p19_p2) target bundleno = 7 (0x7), region = 94 }
 0x232   :  { %649 = vsyncpa [#allocation3], 1 }
 0x233   :  { %651 = vsyncpa [#allocation3 + $0x1], 1 }
 0x234   :  { %652 = vsyncpa [#allocation8], 1 }
 0x235   :  { %653 = vsyncpa [#allocation4], 1 }
 0x236   :  { %655 = vsyncpa [#allocation4 + $0x1], 1 }
 0x237   :  { %656 = vsyncpa [#allocation5], 1 }
 0x238   :  { %658 = vsyncpa [#allocation5 + $0x1], 1 }

</bundles_post_ra>
